<compile_context>
chip_gen: v7x
topology: tpu7x:2x2x1
jax: 0.10.0
libtpu: 0.0.40
codegen_flags: <defaults>
</compile_context>

<pallas_src>
import functools

import jax
import jax.numpy as jnp
from jax import lax
from jax.experimental import pallas as pl
from jax.experimental.pallas import tpu as pltpu


def _tconv_kernel(p_ref, w_ref, b_ref, skip_ref, out_ref, *, cout):
    """One grid step handles `ips` images.

    p_ref    : (ips, K*K*Cin, M)   im2col patches, channel-major (ci, kh, kw)
    w_ref    : (Cout, K*K*Cin)     flipped ConvTranspose2d weight (precomputed)
    b_ref    : (Cout, 1)
    skip_ref : (ips, Cskip, M)
    out_ref  : (ips, Cout+Cskip, M)
    """
    ips = out_ref.shape[0]
    w = w_ref[...]
    b = b_ref[...]
    for i in range(ips):  # static unroll; ips is 1 (v7x) or N (v5e/v6e)
        y = jnp.dot(w, p_ref[i], preferred_element_type=jnp.float32) + b
        out_ref[i, :cout, :] = y.astype(out_ref.dtype)   # lane-dense store
        out_ref[i, cout:, :] = skip_ref[i]               # skip pass-through


def prepare_tconv_params(weight, bias):
    """Hoisted 'module init': ConvTranspose2d params -> matmul operands.

    weight: (Cin, Cout, K, K) (torch ConvTranspose2d layout), bias: (Cout,)
    Returns wmat (Cout, Cin*K*K) in the channel-major (ci, kh, kw) tap order
    produced by lax.conv_general_dilated_patches, and b2 (Cout, 1).
    """
    Cin, Cout, K, _ = weight.shape
    wflip = jnp.flip(weight, axis=(2, 3))                            # (Cin, Cout, K, K)
    wmat = jnp.transpose(wflip, (1, 0, 2, 3)).reshape(Cout, Cin * K * K)
    b2 = bias.reshape(Cout, 1)
    return wmat, b2


def _grid_steps_for_device(n):
    """One grid step per TensorCore: v7x has 2 TCs/chip, v5e/v6e have 1."""
    try:
        kind = jax.devices()[0].device_kind.lower()
    except Exception:
        kind = ""
    if ("v7" in kind or "7x" in kind) and n % 2 == 0:
        return 2
    return 1


@functools.partial(
    jax.jit, static_argnames=("kernel_size", "stride", "padding", "grid_steps"))
def tconv_forward(x_nchw, skip_nchw, wmat, b2, *, kernel_size, stride, padding,
                  grid_steps=None):
    """Equivalent of TConv.forward (ConvTranspose2d + cat), channels-first."""
    N, Cin, H, W = x_nchw.shape
    Cout = wmat.shape[0]
    K, s, p = kernel_size, stride, padding
    Ho = (H - 1) * s - 2 * p + K
    Wo = (W - 1) * s - 2 * p + K
    pad_amt = K - 1 - p
    if pad_amt < 0:
        raise ValueError(
            f"padding={p} > kernel_size-1={K - 1} is not supported by this kernel")

    Cskip = skip_nchw.shape[1]
    Ct = Cout + Cskip
    M = Ho * Wo
    KKC = Cin * K * K

    if grid_steps is None:
        grid_steps = _grid_steps_for_device(N)
    if N % grid_steps != 0:
        grid_steps = 1
    ips = N // grid_steps  # images per grid step

    # Fused im2col in the wrapper (single XLA op): for every output pixel,
    # extract the K*K*Cin window of the stride-dilated, (K-1-p)-padded input.
    # Feature order is channel-major (ci, kh, kw), matching wmat.
    patches = lax.conv_general_dilated_patches(
        x_nchw,
        filter_shape=(K, K),
        window_strides=(1, 1),
        padding=((pad_amt, pad_amt), (pad_amt, pad_amt)),
        lhs_dilation=(s, s),
        dimension_numbers=("NCHW", "OIHW", "NCHW"),
    )                                        # (N, KKC, Ho, Wo)
    patches = patches.reshape(N, KKC, M)     # lane-dense last dim
    skip_flat = skip_nchw.reshape(N, Cskip, M)

    kernel = functools.partial(_tconv_kernel, cout=Cout)

    itemsize = jnp.dtype(x_nchw.dtype).itemsize
    cost = pl.CostEstimate(
        flops=2 * N * Cout * M * KKC,
        transcendentals=0,
        bytes_accessed=int(
            (patches.size + wmat.size + b2.size + skip_flat.size + N * Ct * M)
            * itemsize),
    )

    out_flat = pl.pallas_call(
        kernel,
        out_shape=jax.ShapeDtypeStruct((N, Ct, M), x_nchw.dtype),
        grid_spec=pltpu.PrefetchScalarGridSpec(
            num_scalar_prefetch=0,
            grid=(grid_steps,),
            in_specs=[
                pl.BlockSpec((ips, KKC, M), lambda g: (g, 0, 0)),
                pl.BlockSpec((Cout, KKC), lambda g: (0, 0)),   # resident weight
                pl.BlockSpec((Cout, 1), lambda g: (0, 0)),     # resident bias
                pl.BlockSpec((ips, Cskip, M), lambda g: (g, 0, 0)),
            ],
            out_specs=pl.BlockSpec((ips, Ct, M), lambda g: (g, 0, 0)),
        ),
        compiler_params=pltpu.CompilerParams(dimension_semantics=("parallel",)),
        cost_estimate=cost,
    )(patches, wmat, b2, skip_flat)

    # (N, Ct, Ho*Wo) -> (N, Ct, Ho, Wo): layout-compatible reshape, no movement.
    return out_flat.reshape(N, Ct, Ho, Wo)


def reference_tconv(x, skip, weight, bias, *, stride, padding):
    """Pure-JAX reference matching torch.nn.ConvTranspose2d + cat (NCHW)."""
    K = weight.shape[2]
    pad_amt = K - 1 - padding
    rhs = jnp.transpose(jnp.flip(weight, axis=(2, 3)), (1, 0, 2, 3))  # OIHW
    y = lax.conv_general_dilated(
        x, rhs,
        window_strides=(1, 1),
        padding=((pad_amt, pad_amt), (pad_amt, pad_amt)),
        lhs_dilation=(stride, stride),
        dimension_numbers=("NCHW", "OIHW", "NCHW"),
        precision=lax.Precision.HIGHEST,
    )
    y = y + bias[None, :, None, None]
    return jnp.concatenate([y, skip], axis=1)


if __name__ == "__main__":
    # Module config: TConv(in_ch=4, out_ch=4, kernel_size=4, stride=2)
    in_ch, out_ch, K, stride, padding = 4, 4, 4, 2, 1
    N, H, W = 2, 8, 8
    Ho = (H - 1) * stride - 2 * padding + K   # 16  -> Ho*Wo = 256 (lane-dense)

    key = jax.random.PRNGKey(0)
    kx, ks, kw, kb = jax.random.split(key, 4)
    x = jax.random.normal(kx, (N, in_ch, H, W), jnp.float32)
    skip = jax.random.normal(ks, (N, in_ch, Ho, Ho), jnp.float32)
    # ConvTranspose2d params: weight (in_ch, out_ch, K, K), bias (out_ch,)
    weight = 0.1 * jax.random.normal(kw, (in_ch, out_ch, K, K), jnp.float32)
    bias = 0.1 * jax.random.normal(kb, (out_ch,), jnp.float32)

    # "Module init": weight transform computed once, outside the hot path.
    wmat, b2 = jax.block_until_ready(prepare_tconv_params(weight, bias))

    out = tconv_forward(x, skip, wmat, b2,
                        kernel_size=K, stride=stride, padding=padding)
    out = jax.block_until_ready(out)

    ref = reference_tconv(x, skip, weight, bias, stride=stride, padding=padding)
    assert out.shape == (N, out_ch + in_ch, Ho, Ho), out.shape
    assert jnp.allclose(out, ref, atol=2e-2, rtol=2e-2), float(
        jnp.max(jnp.abs(out - ref)))

    print("KERNEL_OK")
</pallas_src>

<mosaic_0001>
module attributes {stable_mosaic.version = 11 : i64} {
  func.func @_tconv_kernel(%arg0: i32, %arg1: memref<2x64x256xf32, #tpu.memory_space<vmem>>, %arg2: memref<4x64xf32, #tpu.memory_space<vmem>>, %arg3: memref<4x1xf32, #tpu.memory_space<vmem>>, %arg4: memref<2x4x256xf32, #tpu.memory_space<vmem>>, %arg5: memref<2x8x256xf32, #tpu.memory_space<vmem>>) attributes {dimension_semantics = [#tpu.dimension_semantics<parallel>], iteration_bounds = array<i64: 1>, scalar_prefetch = 0 : i64, scratch_operands = 0 : i64, tpu.core_type = #tpu.core_type<tc>, window_params = [{transform_indices = @transform_0, window_bounds = array<i64: 2, 64, 256>}, {pipeline_mode = #tpu.pipeline_mode<synchronous>, transform_indices = @transform_1, window_bounds = array<i64: 4, 64>}, {pipeline_mode = #tpu.pipeline_mode<synchronous>, transform_indices = @transform_2, window_bounds = array<i64: 4, 1>}, {transform_indices = @transform_3, window_bounds = array<i64: 2, 4, 256>}, {transform_indices = @transform_4, window_bounds = array<i64: 2, 8, 256>}]} {
    %c0 = arith.constant 0 : index
    %c0_0 = arith.constant 0 : index
    %0 = vector.load %arg2[%c0, %c0_0] : memref<4x64xf32, #tpu.memory_space<vmem>>, vector<4x64xf32>
    %c0_1 = arith.constant 0 : index
    %c0_2 = arith.constant 0 : index
    %1 = vector.load %arg3[%c0_1, %c0_2] : memref<4x1xf32, #tpu.memory_space<vmem>>, vector<4x1xf32>
    %c0_3 = arith.constant 0 : index
    %c0_4 = arith.constant 0 : index
    %c0_5 = arith.constant 0 : index
    %2 = vector.load %arg1[%c0_3, %c0_4, %c0_5] : memref<2x64x256xf32, #tpu.memory_space<vmem>>, vector<1x64x256xf32>
    %3 = vector.shape_cast %2 : vector<1x64x256xf32> to vector<64x256xf32>
    %cst = arith.constant dense<0.000000e+00> : vector<4x256xf32>
    %4 = tpu.matmul %0, %3, %cst {dimension_numbers = #tpu.dot_dimension_numbers<[1], [0], [0], [1], [0, 0, 1, 1], [], []>} : vector<4x64xf32>, vector<64x256xf32>, vector<4x256xf32> -> vector<4x256xf32>
    %5 = vector.broadcast %1 : vector<4x1xf32> to vector<4x256xf32>
    %6 = arith.addf %4, %5 : vector<4x256xf32>
    %c0_6 = arith.constant 0 : index
    %c0_7 = arith.constant 0 : index
    %c0_8 = arith.constant 0 : index
    %7 = vector.load %arg5[%c0_6, %c0_7, %c0_8] : memref<2x8x256xf32, #tpu.memory_space<vmem>>, vector<1x4x256xf32>
    %8 = vector.shape_cast %7 : vector<1x4x256xf32> to vector<4x256xf32>
    %9 = vector.shape_cast %6 : vector<4x256xf32> to vector<1x4x256xf32>
    tpu.vector_store %arg5[%c0_6, %c0_7, %c0_8], %9 {strides = array<i32>} : memref<2x8x256xf32, #tpu.memory_space<vmem>>, vector<1x4x256xf32>,
    %c0_9 = arith.constant 0 : index
    %c0_10 = arith.constant 0 : index
    %c0_11 = arith.constant 0 : index
    %10 = vector.load %arg4[%c0_9, %c0_10, %c0_11] : memref<2x4x256xf32, #tpu.memory_space<vmem>>, vector<1x4x256xf32>
    %11 = vector.shape_cast %10 : vector<1x4x256xf32> to vector<4x256xf32>
    %c0_12 = arith.constant 0 : index
    %c4 = arith.constant 4 : index
    %c0_13 = arith.constant 0 : index
    %12 = vector.load %arg5[%c0_12, %c4, %c0_13] : memref<2x8x256xf32, #tpu.memory_space<vmem>>, vector<1x4x256xf32>
    %13 = vector.shape_cast %12 : vector<1x4x256xf32> to vector<4x256xf32>
    %14 = vector.shape_cast %11 : vector<4x256xf32> to vector<1x4x256xf32>
    tpu.vector_store %arg5[%c0_12, %c4, %c0_13], %14 {strides = array<i32>} : memref<2x8x256xf32, #tpu.memory_space<vmem>>, vector<1x4x256xf32>,
    %c1 = arith.constant 1 : index
    %c0_14 = arith.constant 0 : index
    %c0_15 = arith.constant 0 : index
    %15 = vector.load %arg1[%c1, %c0_14, %c0_15] : memref<2x64x256xf32, #tpu.memory_space<vmem>>, vector<1x64x256xf32>
    %16 = vector.shape_cast %15 : vector<1x64x256xf32> to vector<64x256xf32>
    %cst_16 = arith.constant dense<0.000000e+00> : vector<4x256xf32>
    %17 = tpu.matmul %0, %16, %cst_16 {dimension_numbers = #tpu.dot_dimension_numbers<[1], [0], [0], [1], [0, 0, 1, 1], [], []>} : vector<4x64xf32>, vector<64x256xf32>, vector<4x256xf32> -> vector<4x256xf32>
    %18 = vector.broadcast %1 : vector<4x1xf32> to vector<4x256xf32>
    %19 = arith.addf %17, %18 : vector<4x256xf32>
    %c1_17 = arith.constant 1 : index
    %c0_18 = arith.constant 0 : index
    %c0_19 = arith.constant 0 : index
    %20 = vector.load %arg5[%c1_17, %c0_18, %c0_19] : memref<2x8x256xf32, #tpu.memory_space<vmem>>, vector<1x4x256xf32>
    %21 = vector.shape_cast %20 : vector<1x4x256xf32> to vector<4x256xf32>
    %22 = vector.shape_cast %19 : vector<4x256xf32> to vector<1x4x256xf32>
    tpu.vector_store %arg5[%c1_17, %c0_18, %c0_19], %22 {strides = array<i32>} : memref<2x8x256xf32, #tpu.memory_space<vmem>>, vector<1x4x256xf32>,
    %c1_20 = arith.constant 1 : index
    %c0_21 = arith.constant 0 : index
    %c0_22 = arith.constant 0 : index
    %23 = vector.load %arg4[%c1_20, %c0_21, %c0_22] : memref<2x4x256xf32, #tpu.memory_space<vmem>>, vector<1x4x256xf32>
    %24 = vector.shape_cast %23 : vector<1x4x256xf32> to vector<4x256xf32>
    %c1_23 = arith.constant 1 : index
    %c4_24 = arith.constant 4 : index
    %c0_25 = arith.constant 0 : index
    %25 = vector.load %arg5[%c1_23, %c4_24, %c0_25] : memref<2x8x256xf32, #tpu.memory_space<vmem>>, vector<1x4x256xf32>
    %26 = vector.shape_cast %25 : vector<1x4x256xf32> to vector<4x256xf32>
    %27 = vector.shape_cast %24 : vector<4x256xf32> to vector<1x4x256xf32>
    tpu.vector_store %arg5[%c1_23, %c4_24, %c0_25], %27 {strides = array<i32>} : memref<2x8x256xf32, #tpu.memory_space<vmem>>, vector<1x4x256xf32>,
    return
  }
  func.func @transform_0(%arg0: i32) -> (i32, i32, i32) {
    %c0_i32 = arith.constant 0 : i32
    %c0_i32_0 = arith.constant 0 : i32
    %c0_i32_1 = arith.constant 0 : i32
    return %arg0, %c0_i32, %c0_i32_0 : i32, i32, i32
  }
  func.func @transform_1(%arg0: i32) -> (i32, i32) {
    %c0_i32 = arith.constant 0 : i32
    %c0_i32_0 = arith.constant 0 : i32
    %c0_i32_1 = arith.constant 0 : i32
    return %c0_i32, %c0_i32_0 : i32, i32
  }
  func.func @transform_2(%arg0: i32) -> (i32, i32) {
    %c0_i32 = arith.constant 0 : i32
    %c0_i32_0 = arith.constant 0 : i32
    %c0_i32_1 = arith.constant 0 : i32
    return %c0_i32, %c0_i32_0 : i32, i32
  }
  func.func @transform_3(%arg0: i32) -> (i32, i32, i32) {
    %c0_i32 = arith.constant 0 : i32
    %c0_i32_0 = arith.constant 0 : i32
    %c0_i32_1 = arith.constant 0 : i32
    return %arg0, %c0_i32, %c0_i32_0 : i32, i32, i32
  }
  func.func @transform_4(%arg0: i32) -> (i32, i32, i32) {
    %c0_i32 = arith.constant 0 : i32
    %c0_i32_0 = arith.constant 0 : i32
    %c0_i32_1 = arith.constant 0 : i32
    return %arg0, %c0_i32, %c0_i32_0 : i32, i32, i32
  }
}

</mosaic_0001>

<bundles_post_ra>
// kernel: tconv_forward.1
= control target key start
LH: loop header
LB: loop body
LE: loop exit
PB: predicated region body
PF: predicated region fallthrough
CT: control target
= control target key end

     0   :  { %v285_v3 = vmov 0.0   ;;  %v286_v8 = vmov 0   ;;  %vm40_vm0 = vcmask 523264   ;;  %s444_s0 = inlined_call_operand.vmem [shape: f32[2,64,256], index: 0, kind: input, shape index: {}]   ;;  %s445_s2 = inlined_call_operand.vmem [shape: f32[4,1], index: 2, kind: input, shape index: {}]   ;;  %s446_s1 = inlined_call_operand.vmem [shape: f32[4,64], index: 1, kind: input, shape index: {}]   ;;  %s447_s3 = inlined_call_operand.vmem [shape: f32[2,4,256], index: 3, kind: input, shape index: {}]   ;;  %s448_s4 = inlined_call_operand.vmem [shape: f32[2,8,256], index: 4, kind: output, shape index: {}]  }
   0x1   :  { %v20_v0 = vld [vmem:[%s444_s0 + $0x8] sm:$0xff]  ;;  %v22_v1 = vld [vmem:[%s444_s0 + $0x18] sm:$0xff]  ;;  %108 = vmatprep.mubr.f32.mxu0 %v285_v3  ;;  %204 = vmatprep.mubr.f32.mxu1 %v285_v3  ;;  %v19_v6 = vld [vmem:[%s444_s0] sm:$0xff] }
   0x2   :  { %v227_v2 = vld [vmem:[%s444_s0 + $0x88] sm:$0xff]  ;;  %v248_v4 = vpack.c.bf16 %v22_v1, %v20_v0  ;;  %v229_v5 = vld [vmem:[%s444_s0 + $0x98] sm:$0xff]  ;;  %v21_v7 = vld [vmem:[%s444_s0 + $0x10] sm:$0xff]  ;;  %282 = vset.pattern.permute.xlu0 %v286_v8 }
   0x3   :  { %v264_v9 = vpack.c.bf16 %v229_v5, %v227_v2  ;;  %v250_v10 = vpack.c.bf16 %v21_v7, %v19_v6  ;;  %v226_v11 = vld [vmem:[%s444_s0 + $0x80] sm:$0xff]  ;;  %v228_v12 = vld [vmem:[%s444_s0 + $0x90] sm:$0xff]  ;;  %v24_v13 = vld [vmem:[%s444_s0 + $0x28] sm:$0xff] }
   0x4   :  { %249 = vmatprep.subr.bf16.mxu0 %v248_v4  ;;  %v266_v14 = vpack.c.bf16 %v228_v12, %v226_v11  ;;  %v26_v15 = vld [vmem:[%s444_s0 + $0x38] sm:$0xff]  ;;  %v231_v16 = vld [vmem:[%s444_s0 + $0xa8] sm:$0xff]  ;;  %v23_v20 = vld [vmem:[%s444_s0 + $0x20] sm:$0xff] }
   0x5   :  { %v233_v17 = vld [vmem:[%s444_s0 + $0xb8] sm:$0xff]  ;;  %265 = vmatprep.subr.bf16.mxu1 %v264_v9  ;;  %251 = vmatpush1.bf16.msra.mxu0 %v250_v10  ;;  %v252_v18 = vpack.c.bf16 %v26_v15, %v24_v13  ;;  %v25_v21 = vld [vmem:[%s444_s0 + $0x30] sm:$0xff]  ;;  %v230_v22 = vld [vmem:[%s444_s0 + $0xa0] sm:$0xff] }
   0x6   :  { %v268_v19 = vpack.c.bf16 %v233_v17, %v231_v16  ;;  %267 = vmatpush1.bf16.msra.mxu1 %v266_v14  ;;  %v254_v23 = vpack.c.bf16 %v25_v21, %v23_v20  ;;  %v232_v24 = vld [vmem:[%s444_s0 + $0xb0] sm:$0xff]  ;;  %v28_v25 = vld [vmem:[%s444_s0 + $0x48] sm:$0xff]  ;;  %v30_v26 = vld [vmem:[%s444_s0 + $0x58] sm:$0xff] }
   0x7   :  { %253 = vmatprep.subr.bf16.mxu0 %v252_v18  ;;  %v270_v27 = vpack.c.bf16 %v232_v24, %v230_v22  ;;  %v256_v28 = vpack.c.bf16 %v30_v26, %v28_v25  ;;  %v235_v29 = vld [vmem:[%s444_s0 + $0xc8] sm:$0xff]  ;;  %v237_v30 = vld [vmem:[%s444_s0 + $0xd8] sm:$0xff]  ;;  %v27_v31 = vld [vmem:[%s444_s0 + $0x40] sm:$0xff] }
   0x8   :  { %269 = vmatprep.subr.bf16.mxu1 %v268_v19  ;;  %v272_v32 = vpack.c.bf16 %v237_v30, %v235_v29  ;;  %v29_v33 = vld [vmem:[%s444_s0 + $0x50] sm:$0xff]  ;;  %v234_v34 = vld [vmem:[%s444_s0 + $0xc0] sm:$0xff]  ;;  %v32_v37 = vld [vmem:[%s444_s0 + $0x68] sm:$0xff] }
   0x9   :  { %v236_v35 = vld [vmem:[%s444_s0 + $0xd0] sm:$0xff]  ;;  %255 = vmatpush1.bf16.msra.mxu0 %v254_v23  ;;  %v258_v36 = vpack.c.bf16 %v29_v33, %v27_v31  ;;  %v34_v38 = vld [vmem:[%s444_s0 + $0x78] sm:$0xff]  ;;  %v239_v39 = vld [vmem:[%s444_s0 + $0xe8] sm:$0xff] }
   0xa   :  { %271 = vmatpush1.bf16.msra.mxu1 %v270_v27  ;;  %257 = vmatprep.subr.bf16.mxu0 %v256_v28  ;;  %v274_v40 = vpack.c.bf16 %v236_v35, %v234_v34  ;;  %v260_v41 = vpack.c.bf16 %v34_v38, %v32_v37  ;;  %v241_v42 = vld [vmem:[%s444_s0 + $0xf8] sm:$0xff]  ;;  %v31_v43 = vld [vmem:[%s444_s0 + $0x60] sm:$0xff]  ;;  %v33_v44 = vld [vmem:[%s444_s0 + $0x70] sm:$0xff] }
   0xb   :  { %273 = vmatprep.subr.bf16.mxu1 %v272_v32  ;;  %v276_v45 = vpack.c.bf16 %v241_v42, %v239_v39  ;;  %v238_v46 = vld [vmem:[%s444_s0 + $0xe0] sm:$0xff]  ;;  %v240_v47 = vld [vmem:[%s444_s0 + $0xf0] sm:$0xff]  ;;  %v262_v49 = vpack.c.bf16 %v33_v44, %v31_v43  ;;  %v245_v53 = vld [vmem:[%s447_s3 + $0x8] sm:$0xff] }
   0xc   :  { %v18_v48 = vld [vmem:[%s445_s2] sm:$0xf]  ;;  %v278_v50 = vpack.c.bf16 %v240_v47, %v238_v46  ;;  %v217_v55 = vcombine.low %v245_v53, %v245_v53  ;;  %247 = vst [vmem:[%s448_s4 + $0x18] sm:$0xf0] %v245_v53 }
   0xd   :  { %259 = vmatpush1.bf16.msra.mxu0 %v258_v36  ;;  %37 = vperm.xlu0 %282, %v18_v48   ;;  %v17_v51 = vld [vmem:[%s446_s1] sm:$0xf] }
   0xe   :  { %275 = vmatpush1.bf16.msra.mxu1 %v274_v40  ;;  %261 = vmatprep.subr.bf16.mxu0 %v260_v41  ;;  %v117_v52 = vld [vmem:[%s447_s3] sm:$0xff]  ;;  %246 = vst [vmem:[%s448_s4 + $0x10] sm:$0xf0] %v217_v55 }
   0xf   :  { %277 = vmatprep.subr.bf16.mxu1 %v276_v45  ;;  %v119_v54 = vcombine.low %v117_v52, %v117_v52  ;;  %122 = vst [vmem:[%s448_s4 + $0x8] sm:$0xf0] %v117_v52 }
  0x11   :  { %263 = vmatpush1.bf16.msra.mxu0 %v262_v49  ;;  %121 = vst [vmem:[%s448_s4] sm:$0xf0] %v119_v54 }
  0x12   :  { %279 = vmatpush1.bf16.msra.mxu1 %v278_v50 }
  0x14   :  { %225 = vmatmul.mubr.msk.f32.vlgmr.msra.gmra.mrb[0].mxu0 %vm40_vm0, %v17_v51 }
  0x15   :  { %242 = vmatmul.mubr.msk.f32.vlgmr.msra.gmra.mrb[0].mxu1 %vm40_vm0, %v17_v51 }
  0x8c   :  { %v38_v56 = vpop.permute.xlu0 %37 }
  0xe7   :  { %v110_v57 = vpop.f32.mrb[0].mxu0 }
  0xe8   :  { %v111_v58 = vadd.f32 %v110_v57, %v38_v56  ;;  %v206_v59 = vpop.f32.mrb[0].mxu1  ;;  %v112_v60 = vpop.f32.mrb[1].mxu0 }
  0xe9   :  { %v207_v61 = vadd.f32 %v206_v59, %v38_v56  ;;  %v113_v62 = vadd.f32 %v112_v60, %v38_v56  ;;  %v208_v63 = vpop.f32.mrb[1].mxu1 }
  0xea   :  { %115 = vst [vmem:[%s448_s4] sm:$0xf] %v111_v58  ;;  %v209_v0 = vadd.f32 %v208_v63, %v38_v56 }
  0xeb   :  { %243 = vst [vmem:[%s448_s4 + $0x10] sm:$0xf] %v207_v61  ;;  %116 = vst [vmem:[%s448_s4 + $0x8] sm:$0xf] %v113_v62 }
  0xec   :  { %244 = vst [vmem:[%s448_s4 + $0x18] sm:$0xf] %v209_v0 }

</bundles_post_ra>
